<compile_context>
chip_gen: v7x
topology: tpu7x:2x2x1
jax: 0.10.0
libtpu: 0.0.40
codegen_flags: <defaults>
</compile_context>

<pallas_src>
import functools

import jax
import jax.numpy as jnp
from jax.experimental import pallas as pl
from jax.experimental.pallas import tpu as pltpu

OUTPUT_NUM_FEATURES = 512


def _round_up(x, m):
    return ((x + m - 1) // m) * m


def _pool_linear_kernel(x_ref, w_ref, b_ref, o_ref, acc_ref, *, inv_hw):
    # x_ref: (tile_b, tile_hw, C)   channels-last feature chunk
    # w_ref: (C, OUT)               linear weight (in x out), VMEM resident
    # b_ref: (1, OUT)               linear bias, VMEM resident
    # o_ref: (tile_b, OUT)
    # acc_ref: (tile_b, C) f32      running spatial sum for this batch tile
    hw = pl.program_id(1)

    @pl.when(hw == 0)
    def _():
        acc_ref[...] = jnp.zeros_like(acc_ref)

    # Partial sum over this HW chunk; C on the lane dim -> dense VPU adds.
    # (astype is a no-op for f32 inputs; keeps an f32 accumulator for bf16 x.)
    acc_ref[...] += jnp.sum(x_ref[...].astype(jnp.float32), axis=1)

    @pl.when(hw == pl.num_programs(1) - 1)
    def _():
        pooled = acc_ref[...] * inv_hw                        # (tile_b, C)
        out = jnp.dot(pooled, w_ref[...].astype(jnp.float32),
                      preferred_element_type=jnp.float32)     # (tile_b, OUT)
        o_ref[...] = (out + b_ref[...].astype(jnp.float32)).astype(o_ref.dtype)


def pretrained_feature_extractor_forward(x, weight, bias, *,
                                         tile_b=8, tile_hw=128):
    """x: (B, C, H, W), weight: (C, 512), bias: (512,) -> (B, 512)."""
    B, C, H, W = x.shape
    assert H == W, "reference avg_pool2d uses a square kernel of size W"
    HW = H * W

    # Channels-last so C is the lane dim inside the kernel.
    x_bhwc = jnp.transpose(x, (0, 2, 3, 1)).reshape(B, HW, C)

    # Tile sizing: keep blocks small enough that double-buffered x tiles fit
    # comfortably in scoped VMEM on all generations (v5e 16MiB default raised
    # to 32MiB below; v7x has 64MiB physical).
    if B <= tile_b:
        tile_b = B                      # block == full dim (always legal)
    else:
        tile_b = _round_up(tile_b, 8)   # satisfy (8,128) rule on out block
    tile_hw = min(tile_hw, _round_up(HW, 8))
    tile_hw = _round_up(tile_hw, 8)

    B_pad = _round_up(B, tile_b)
    HW_pad = _round_up(HW, tile_hw)
    if (B_pad, HW_pad) != (B, HW):
        # Zero-pad: padded HW rows add 0 to the spatial sum (true 1/HW scale is
        # applied at finalize), padded batch rows are sliced off below.
        x_bhwc = jnp.pad(x_bhwc,
                         ((0, B_pad - B), (0, HW_pad - HW), (0, 0)))

    b2d = bias.reshape(1, OUTPUT_NUM_FEATURES)
    grid = (B_pad // tile_b, HW_pad // tile_hw)

    kernel = functools.partial(_pool_linear_kernel, inv_hw=1.0 / float(HW))

    out = pl.pallas_call(
        kernel,
        out_shape=jax.ShapeDtypeStruct((B_pad, OUTPUT_NUM_FEATURES),
                                       jnp.float32),
        grid_spec=pltpu.PrefetchScalarGridSpec(
            num_scalar_prefetch=0,
            grid=grid,
            in_specs=[
                pl.BlockSpec((tile_b, tile_hw, C), lambda b, h: (b, h, 0)),
                pl.BlockSpec((C, OUTPUT_NUM_FEATURES), lambda b, h: (0, 0)),
                pl.BlockSpec((1, OUTPUT_NUM_FEATURES), lambda b, h: (0, 0)),
            ],
            out_specs=pl.BlockSpec((tile_b, OUTPUT_NUM_FEATURES),
                                   lambda b, h: (b, 0)),
            scratch_shapes=[pltpu.VMEM((tile_b, C), jnp.float32)],
        ),
        compiler_params=pltpu.CompilerParams(
            # batch tiles shard across TCs on v7x; HW is the reduction axis.
            dimension_semantics=("parallel", "arbitrary"),
            vmem_limit_bytes=32 * 1024 * 1024,
        ),
    )(x_bhwc, weight, b2d)
    return out[:B]


def _reference(x, weight, bias):
    pooled = jnp.mean(x, axis=(2, 3))          # (B, C)
    return pooled @ weight + bias[None, :]     # (B, 512)


if __name__ == "__main__":
    key = jax.random.PRNGKey(0)
    kx, kw, kb = jax.random.split(key, 3)

    # Small shapes consistent with the forward pass.
    B, C, H, W = 2, 4, 16, 16
    x = jax.random.normal(kx, (B, C, H, W), dtype=jnp.float32)

    # nn.Linear(C, 512) default init: U(-1/sqrt(C), 1/sqrt(C)); deterministic here.
    bound = 1.0 / (C ** 0.5)
    weight = jax.random.uniform(kw, (C, OUTPUT_NUM_FEATURES),
                                dtype=jnp.float32, minval=-bound, maxval=bound)
    bias = jax.random.uniform(kb, (OUTPUT_NUM_FEATURES,),
                              dtype=jnp.float32, minval=-bound, maxval=bound)

    out = pretrained_feature_extractor_forward(x, weight, bias)
    out = jax.block_until_ready(out)

    ref = _reference(x, weight, bias)
    assert out.shape == (B, OUTPUT_NUM_FEATURES)
    assert jnp.allclose(out, ref, atol=1e-5, rtol=1e-5)
    print("KERNEL_OK")
</pallas_src>

<mosaic_0001>
module attributes {stable_mosaic.version = 11 : i64} {
  func.func @_pool_linear_kernel(%arg0: i32, %arg1: i32, %arg2: memref<2x128x4xf32, #tpu.memory_space<vmem>>, %arg3: memref<4x512xf32, #tpu.memory_space<vmem>>, %arg4: memref<1x512xf32, #tpu.memory_space<vmem>>, %arg5: memref<2x512xf32, #tpu.memory_space<vmem>>, %arg6: memref<2x4xf32, #tpu.memory_space<vmem>>) attributes {dimension_semantics = [#tpu.dimension_semantics<parallel>, #tpu.dimension_semantics<arbitrary>], iteration_bounds = array<i64: 1, 2>, scalar_prefetch = 0 : i64, scratch_operands = 1 : i64, tpu.core_type = #tpu.core_type<tc>, window_params = [{transform_indices = @transform_0, window_bounds = array<i64: 2, 128, 4>}, {pipeline_mode = #tpu.pipeline_mode<synchronous>, transform_indices = @transform_1, window_bounds = array<i64: 4, 512>}, {pipeline_mode = #tpu.pipeline_mode<synchronous>, transform_indices = @transform_2, window_bounds = array<i64: 1, 512>}, {transform_indices = @transform_3, window_bounds = array<i64: 2, 512>}]} {
    %c0_i32 = arith.constant 0 : i32
    %0 = arith.cmpi eq, %arg1, %c0_i32 : i32
    %1 = arith.extui %0 : i1 to i32
    %c0_i32_0 = arith.constant 0 : i32
    %2 = arith.cmpi ne, %1, %c0_i32_0 : i32
    scf.if %2 {
      %cst_8 = arith.constant 0.000000e+00 : f32
      %11 = vector.broadcast %cst_8 : f32 to vector<2x4xf32>
      %c0_9 = arith.constant 0 : index
      %c0_10 = arith.constant 0 : index
      %12 = vector.load %arg6[%c0_9, %c0_10] : memref<2x4xf32, #tpu.memory_space<vmem>>, vector<2x4xf32>
      tpu.vector_store %arg6[%c0_9, %c0_10], %11 {strides = array<i32>} : memref<2x4xf32, #tpu.memory_space<vmem>>, vector<2x4xf32>,
    } else {
    }
    %c0 = arith.constant 0 : index
    %c0_1 = arith.constant 0 : index
    %3 = vector.load %arg6[%c0, %c0_1] : memref<2x4xf32, #tpu.memory_space<vmem>>, vector<2x4xf32>
    %c0_2 = arith.constant 0 : index
    %c0_3 = arith.constant 0 : index
    %c0_4 = arith.constant 0 : index
    %4 = vector.load %arg2[%c0_2, %c0_3, %c0_4] : memref<2x128x4xf32, #tpu.memory_space<vmem>>, vector<2x128x4xf32>
    %cst = arith.constant dense<0.000000e+00> : vector<2x4xf32>
    %5 = vector.multi_reduction <add>, %4, %cst [1] : vector<2x128x4xf32> to vector<2x4xf32>
    %6 = arith.addf %3, %5 : vector<2x4xf32>
    %c0_5 = arith.constant 0 : index
    %c0_6 = arith.constant 0 : index
    %7 = vector.load %arg6[%c0_5, %c0_6] : memref<2x4xf32, #tpu.memory_space<vmem>>, vector<2x4xf32>
    tpu.vector_store %arg6[%c0_5, %c0_6], %6 {strides = array<i32>} : memref<2x4xf32, #tpu.memory_space<vmem>>, vector<2x4xf32>,
    %c1_i32 = arith.constant 1 : i32
    %8 = arith.cmpi eq, %arg1, %c1_i32 : i32
    %9 = arith.extui %8 : i1 to i32
    %c0_i32_7 = arith.constant 0 : i32
    %10 = arith.cmpi ne, %9, %c0_i32_7 : i32
    scf.if %10 {
      %c0_8 = arith.constant 0 : index
      %c0_9 = arith.constant 0 : index
      %11 = vector.load %arg6[%c0_8, %c0_9] : memref<2x4xf32, #tpu.memory_space<vmem>>, vector<2x4xf32>
      %cst_10 = arith.constant 3.906250e-03 : f32
      %12 = vector.broadcast %cst_10 : f32 to vector<2x4xf32>
      %13 = arith.mulf %11, %12 : vector<2x4xf32>
      %c0_11 = arith.constant 0 : index
      %c0_12 = arith.constant 0 : index
      %14 = vector.load %arg3[%c0_11, %c0_12] : memref<4x512xf32, #tpu.memory_space<vmem>>, vector<4x512xf32>
      %cst_13 = arith.constant dense<0.000000e+00> : vector<2x512xf32>
      %15 = tpu.matmul %13, %14, %cst_13 {dimension_numbers = #tpu.dot_dimension_numbers<[1], [0], [0], [1], [0, 0, 1, 1], [], []>} : vector<2x4xf32>, vector<4x512xf32>, vector<2x512xf32> -> vector<2x512xf32>
      %c0_14 = arith.constant 0 : index
      %c0_15 = arith.constant 0 : index
      %16 = vector.load %arg4[%c0_14, %c0_15] : memref<1x512xf32, #tpu.memory_space<vmem>>, vector<1x512xf32>
      %17 = vector.broadcast %16 : vector<1x512xf32> to vector<2x512xf32>
      %18 = arith.addf %15, %17 : vector<2x512xf32>
      %c0_16 = arith.constant 0 : index
      %c0_17 = arith.constant 0 : index
      %19 = vector.load %arg5[%c0_16, %c0_17] : memref<2x512xf32, #tpu.memory_space<vmem>>, vector<2x512xf32>
      tpu.vector_store %arg5[%c0_16, %c0_17], %18 {strides = array<i32>} : memref<2x512xf32, #tpu.memory_space<vmem>>, vector<2x512xf32>,
    } else {
    }
    return
  }
  func.func @transform_0(%arg0: i32, %arg1: i32) -> (i32, i32, i32) {
    %c0_i32 = arith.constant 0 : i32
    %c0_i32_0 = arith.constant 0 : i32
    return %arg0, %arg1, %c0_i32 : i32, i32, i32
  }
  func.func @transform_1(%arg0: i32, %arg1: i32) -> (i32, i32) {
    %c0_i32 = arith.constant 0 : i32
    %c0_i32_0 = arith.constant 0 : i32
    %c0_i32_1 = arith.constant 0 : i32
    return %c0_i32, %c0_i32_0 : i32, i32
  }
  func.func @transform_2(%arg0: i32, %arg1: i32) -> (i32, i32) {
    %c0_i32 = arith.constant 0 : i32
    %c0_i32_0 = arith.constant 0 : i32
    %c0_i32_1 = arith.constant 0 : i32
    return %c0_i32, %c0_i32_0 : i32, i32
  }
  func.func @transform_3(%arg0: i32, %arg1: i32) -> (i32, i32) {
    %c0_i32 = arith.constant 0 : i32
    %c0_i32_0 = arith.constant 0 : i32
    return %arg0, %c0_i32 : i32, i32
  }
}

</mosaic_0001>

<bundles_post_ra>
// kernel: tpu_custom_call.1
= control target key start
LH: loop header
LB: loop body
LE: loop exit
PB: predicated region body
PF: predicated region fallthrough
CT: control target
= control target key end

     0   :  { %8 = vsyncpa [#allocation5], 0  ;;  %s909_s12 = smov 0   ;;  %s911_s13 = smov 0   ;;  %s1146_s0 = inlined_call_operand.vmem [shape: f32[2,256,4], index: 0, kind: input, shape index: {}]   ;;  %s1147_s1 = inlined_call_operand.vmem [shape: f32[4,512], index: 1, kind: input, shape index: {}]   ;;  %s1148_s2 = inlined_call_operand.vmem [shape: f32[1,512], index: 2, kind: input, shape index: {}]   ;;  %s1149_s3 = inlined_call_operand.hbm [shape: f32[2,512], index: 3, kind: output, shape index: {}]  }
   0x1   :  { %s913_s14 = smov 0   ;;  %s915_s15 = smov 0  }
   0x2   :  { %s917_s16 = smov 0  }
   0x3 LB: > { %s742_s17 = sadd.s32 4294967295, %s883_s16   ;;  %s23_s18 = sadd.s32 1, %s879_s15  ;;  %s883_s16 = sphi %s917_s16, %s14_s16   ;;  %s879_s15 = sphi %s915_s15, %s1154_s15   ;;  %s875_s14 = sphi %s913_s14, %s1153_s14   ;;  %s871_s13 = sphi %s911_s13, %s1152_s13   ;;  %s867_s12 = sphi %s909_s12, %s1151_s12  }
   0x4   : > { %p24_p0 = scmp.ge.s32.totalorder %s23_s18, 2  ;;  %p42_p1 = scmp.ne.s32.totalorder %s871_s13, %s867_s12 }
   0x5   : > { %p43_p2 = scmp.eq.s32.totalorder %s883_s16, 0  ;;  %s35_s20 = sadd.s32 1, %s871_s13 }
   0x6   : > { %s1156_s18 = smov (%p24_p0, %s23_s18), 0  ;;  %p744_p5 = scmp.ge.s32.totalorder %s883_s16, 2 }
   0x7   : > { %p44_p3 = por %p43_p2, %p42_p1  ;;  %s31_s19 = ssub.s32 %s879_s15, %s1156_s18 }
   0x8   : > { %p33_p4 = scmp.eq.s32.totalorder %s31_s19, 0  ;;  %142 = sbr.rel (%p744_p5) target bundleno = 35 (0x23), region = 24 }
   0xa   : > { %s945_s21 = scalar_select %p33_p4, %s871_s13, %s35_s20  }
   0xf   : > { %145 = sbr.rel (!%p44_p3) target bundleno = 35 (0x23), region = 28  ;;  %s147_s22 = sand.u32 (%p44_p3), 1, %s871_s13  }
  0x10   : > { %s762_s23 = sshll.u32 (%p44_p3), %s879_s15, 7  ;;  %s745_s24 = sshll.u32 (%p44_p3), %s147_s22, 8 }
  0x11   : > { %s953_s27 = scalar_lea.vmem (%p44_p3), %s1146_s0, %s762_s23  ;;  %s958_s28 = scalar_lea.vmem (%p44_p3), [#allocation3], %s745_s24 }
  0x12   : > { %v245_v0 = vld [vmem:[%s953_s27] sm:$0xff] (%p44_p3)  ;;  %v247_v1 = vld [vmem:[%s953_s27 + $0x8] sm:$0xff] (%p44_p3)  ;;  %v249_v2 = vld [vmem:[%s953_s27 + $0x10] sm:$0xff] (%p44_p3) }
  0x13   : > { %246 = vst [vmem:[%s958_s28] sm:$0xff] (%p44_p3), %v245_v0  ;;  %248 = vst [vmem:[%s958_s28 + $0x8] sm:$0xff] (%p44_p3), %v247_v1  ;;  %v251_v3 = vld [vmem:[%s953_s27 + $0x18] sm:$0xff] (%p44_p3)  ;;  %v253_v4 = vld [vmem:[%s953_s27 + $0x20] sm:$0xff] (%p44_p3) }
  0x14   : > { %250 = vst [vmem:[%s958_s28 + $0x10] sm:$0xff] (%p44_p3), %v249_v2  ;;  %v255_v5 = vld [vmem:[%s953_s27 + $0x28] sm:$0xff] (%p44_p3)  ;;  %252 = vst [vmem:[%s958_s28 + $0x18] sm:$0xff] (%p44_p3), %v251_v3  ;;  %v257_v6 = vld [vmem:[%s953_s27 + $0x30] sm:$0xff] (%p44_p3) }
  0x15   : > { %254 = vst [vmem:[%s958_s28 + $0x20] sm:$0xff] (%p44_p3), %v253_v4  ;;  %256 = vst [vmem:[%s958_s28 + $0x28] sm:$0xff] (%p44_p3), %v255_v5  ;;  %v259_v7 = vld [vmem:[%s953_s27 + $0x38] sm:$0xff] (%p44_p3)  ;;  %v261_v8 = vld [vmem:[%s953_s27 + $0x40] sm:$0xff] (%p44_p3) }
  0x16   : > { %258 = vst [vmem:[%s958_s28 + $0x30] sm:$0xff] %v257_v6  ;;  %260 = vst [vmem:[%s958_s28 + $0x38] sm:$0xff] %v259_v7  ;;  %v263_v9 = vld [vmem:[%s953_s27 + $0x48] sm:$0xff]  ;;  %v265_v10 = vld [vmem:[%s953_s27 + $0x50] sm:$0xff] }
  0x17   : > { %262 = vst [vmem:[%s958_s28 + $0x40] sm:$0xff] %v261_v8  ;;  %v267_v11 = vld [vmem:[%s953_s27 + $0x58] sm:$0xff]  ;;  %264 = vst [vmem:[%s958_s28 + $0x48] sm:$0xff] %v263_v9  ;;  %v269_v12 = vld [vmem:[%s953_s27 + $0x60] sm:$0xff] }
  0x18   : > { %266 = vst [vmem:[%s958_s28 + $0x50] sm:$0xff] %v265_v10  ;;  %268 = vst [vmem:[%s958_s28 + $0x58] sm:$0xff] %v267_v11  ;;  %v271_v13 = vld [vmem:[%s953_s27 + $0x68] sm:$0xff]  ;;  %v273_v14 = vld [vmem:[%s953_s27 + $0x70] sm:$0xff] }
  0x19   : > { %270 = vst [vmem:[%s958_s28 + $0x60] sm:$0xff] %v269_v12  ;;  %272 = vst [vmem:[%s958_s28 + $0x68] sm:$0xff] %v271_v13  ;;  %v275_v15 = vld [vmem:[%s953_s27 + $0x78] sm:$0xff]  ;;  %v277_v16 = vld [vmem:[%s953_s27 + $0x100] sm:$0xff] }
  0x1a   : > { %274 = vst [vmem:[%s958_s28 + $0x70] sm:$0xff] %v273_v14  ;;  %v279_v17 = vld [vmem:[%s953_s27 + $0x108] sm:$0xff]  ;;  %276 = vst [vmem:[%s958_s28 + $0x78] sm:$0xff] %v275_v15  ;;  %v281_v18 = vld [vmem:[%s953_s27 + $0x110] sm:$0xff] }
  0x1b   : > { %278 = vst [vmem:[%s958_s28 + $0x80] sm:$0xff] %v277_v16  ;;  %280 = vst [vmem:[%s958_s28 + $0x88] sm:$0xff] %v279_v17  ;;  %v283_v19 = vld [vmem:[%s953_s27 + $0x118] sm:$0xff]  ;;  %v285_v20 = vld [vmem:[%s953_s27 + $0x120] sm:$0xff] }
  0x1c   : > { %282 = vst [vmem:[%s958_s28 + $0x90] sm:$0xff] %v281_v18  ;;  %284 = vst [vmem:[%s958_s28 + $0x98] sm:$0xff] %v283_v19  ;;  %v287_v21 = vld [vmem:[%s953_s27 + $0x128] sm:$0xff]  ;;  %v289_v22 = vld [vmem:[%s953_s27 + $0x130] sm:$0xff] }
  0x1d   : > { %286 = vst [vmem:[%s958_s28 + $0xa0] sm:$0xff] %v285_v20  ;;  %v291_v23 = vld [vmem:[%s953_s27 + $0x138] sm:$0xff]  ;;  %288 = vst [vmem:[%s958_s28 + $0xa8] sm:$0xff] %v287_v21  ;;  %v293_v24 = vld [vmem:[%s953_s27 + $0x140] sm:$0xff] }
  0x1e   : > { %290 = vst [vmem:[%s958_s28 + $0xb0] sm:$0xff] %v289_v22  ;;  %292 = vst [vmem:[%s958_s28 + $0xb8] sm:$0xff] %v291_v23  ;;  %v295_v25 = vld [vmem:[%s953_s27 + $0x148] sm:$0xff]  ;;  %v297_v26 = vld [vmem:[%s953_s27 + $0x150] sm:$0xff] }
  0x1f   : > { %294 = vst [vmem:[%s958_s28 + $0xc0] sm:$0xff] %v293_v24  ;;  %296 = vst [vmem:[%s958_s28 + $0xc8] sm:$0xff] %v295_v25  ;;  %v299_v27 = vld [vmem:[%s953_s27 + $0x158] sm:$0xff]  ;;  %v301_v28 = vld [vmem:[%s953_s27 + $0x160] sm:$0xff] }
  0x20   : > { %298 = vst [vmem:[%s958_s28 + $0xd0] sm:$0xff] %v297_v26  ;;  %v303_v29 = vld [vmem:[%s953_s27 + $0x168] sm:$0xff]  ;;  %300 = vst [vmem:[%s958_s28 + $0xd8] sm:$0xff] %v299_v27  ;;  %v305_v30 = vld [vmem:[%s953_s27 + $0x170] sm:$0xff] }
  0x21   : > { %302 = vst [vmem:[%s958_s28 + $0xe0] sm:$0xff] %v301_v28  ;;  %304 = vst [vmem:[%s958_s28 + $0xe8] sm:$0xff] %v303_v29  ;;  %v307_v31 = vld [vmem:[%s953_s27 + $0x178] sm:$0xff] }
  0x22   : > { %306 = vst [vmem:[%s958_s28 + $0xf0] sm:$0xff] %v305_v30  ;;  %308 = vst [vmem:[%s958_s28 + $0xf8] sm:$0xff] %v307_v31 }
  0x23 PF: > { %p748_p6 = scmp.ge.s32.totalorder %s883_s16, 1  ;;  %p313_p7 = scmp.lt.s32.totalorder %s883_s16, 3 }
  0x25   : > { %p314_p8 = pnand %p748_p6, %p313_p7 }
  0x26   : > { %s320_s29 = sand.u32 (!%p314_p8), 1, %s867_s12   ;;  %p750_p9 = scmp.ne.s32.totalorder (!%p314_p8), %s875_s14, 0 }
  0x27   : > { %317 = sbr.rel (%p314_p8) target bundleno = 359 (0x167), region = 66  ;;  %s749_s30 = sshll.u32 (!%p314_p8), %s320_s29, 8 }
  0x28   : > { %s1024_s4 = scalar_lea.vmem (!%p314_p8), [#allocation3], %s749_s30 }
  0x2e   : > { %343 = sbr.rel (%p750_p9) target bundleno = 53 (0x35), region = 74  ;;  %vm344_vm0 = vcmask (!%p750_p9), 25600   ;;  %v885_v32 = vmov (!%p750_p9), 0.0  }
  0x2f   : > { %345 = vst.msk [vmem:[#allocation2] sm:$0x3] (!%p750_p9), %vm344_vm0, %v885_v32 }
  0x35 PF: > { %v347_v33 = vld [vmem:[%s1024_s4] sm:$0xff]  ;;  %v348_v34 = vld [vmem:[%s1024_s4 + $0x8] sm:$0xff]  ;;  %vm379_vm1 = vcmask 31744   ;;  %v349_v35 = vld [vmem:[%s1024_s4 + $0x10] sm:$0xff]  ;;  %vm456_vm2 = vcmask 1041409   ;;  %vm460_vm3 = vcmask 25600  }
  0x36   : > { %v350_v36 = vld [vmem:[%s1024_s4 + $0x18] sm:$0xff]  ;;  %v380_v37 = vsel %vm379_vm1, %v347_v33, 0.0  ;;  %v381_v38 = vsel %vm379_vm1, %v348_v34, 0.0  ;;  %v351_v39 = vld [vmem:[%s1024_s4 + $0x20] sm:$0xff]  ;;  %v383_v41 = vsel %vm379_vm1, %v349_v35, 0.0  ;;  %v352_v43 = vld [vmem:[%s1024_s4 + $0x28] sm:$0xff] }
  0x37   : > { %v382_v40 = vadd.f32 %v381_v38, %v380_v37  ;;  %v385_v42 = vsel %vm379_vm1, %v350_v36, 0.0  ;;  %v353_v45 = vld [vmem:[%s1024_s4 + $0x30] sm:$0xff]  ;;  %v363_v46 = vld [vmem:[%s1024_s4 + $0x80] sm:$0xff]  ;;  %v387_v47 = vsel %vm379_vm1, %v351_v39, 0.0  ;;  %v364_v48 = vld [vmem:[%s1024_s4 + $0x88] sm:$0xff]  ;;  %v389_v53 = vsel %vm379_vm1, %v352_v43, 0.0 }
  0x38   : > { %v365_v49 = vld [vmem:[%s1024_s4 + $0x90] sm:$0xff]  ;;  %v366_v50 = vld [vmem:[%s1024_s4 + $0x98] sm:$0xff]  ;;  %v417_v52 = vsel %vm379_vm1, %v363_v46, 0.0  ;;  %v418_v54 = vsel %vm379_vm1, %v364_v48, 0.0  ;;  %v367_v57 = vld [vmem:[%s1024_s4 + $0xa0] sm:$0xff]  ;;  %v391_v60 = vsel %vm379_vm1, %v353_v45, 0.0 }
  0x39   : > { %v384_v44 = vadd.f32 %v383_v41, %v382_v40  ;;  %v420_v55 = vsel %vm379_vm1, %v365_v49, 0.0  ;;  %v354_v56 = vld [vmem:[%s1024_s4 + $0x38] sm:$0xff]  ;;  %v419_v59 = vadd.f32 %v418_v54, %v417_v52  ;;  %v422_v61 = vsel %vm379_vm1, %v366_v50, 0.0  ;;  %v355_v62 = vld [vmem:[%s1024_s4 + $0x40] sm:$0xff]  ;;  %v368_v63 = vld [vmem:[%s1024_s4 + $0xa8] sm:$0xff]  ;;  %p751_p10 = scmp.ne.s32.totalorder %s875_s14, 1 }
  0x3a   : > { %v393_v2 = vsel %vm379_vm1, %v354_v56, 0.0  ;;  %v424_v3 = vsel %vm379_vm1, %v367_v57, 0.0  ;;  %v356_v4 = vld [vmem:[%s1024_s4 + $0x48] sm:$0xff]  ;;  %v369_v5 = vld [vmem:[%s1024_s4 + $0xb0] sm:$0xff]  ;;  %v395_v8 = vsel %vm379_vm1, %v355_v62, 0.0  ;;  %v426_v9 = vsel %vm379_vm1, %v368_v63, 0.0 }
  0x3b   : > { %v386_v51 = vadd.f32 %v385_v42, %v384_v44  ;;  %v421_v1 = vadd.f32 %v420_v55, %v419_v59  ;;  %v357_v10 = vld [vmem:[%s1024_s4 + $0x50] sm:$0xff]  ;;  %v370_v11 = vld [vmem:[%s1024_s4 + $0xb8] sm:$0xff]  ;;  %v397_v14 = vsel %vm379_vm1, %v356_v4, 0.0  ;;  %v428_v15 = vsel %vm379_vm1, %v369_v5, 0.0  ;;  %v371_v17 = vld [vmem:[%s1024_s4 + $0xc0] sm:$0xff] }
  0x3c   : > { %v358_v16 = vld [vmem:[%s1024_s4 + $0x58] sm:$0xff]  ;;  %v399_v20 = vsel %vm379_vm1, %v357_v10, 0.0  ;;  %v430_v21 = vsel %vm379_vm1, %v370_v11, 0.0  ;;  %v359_v22 = vld [vmem:[%s1024_s4 + $0x60] sm:$0xff]  ;;  %v372_v23 = vld [vmem:[%s1024_s4 + $0xc8] sm:$0xff]  ;;  %v432_v27 = vsel %vm379_vm1, %v371_v17, 0.0 }
  0x3d   : > { %v388_v58 = vadd.f32 %v387_v47, %v386_v51  ;;  %v423_v7 = vadd.f32 %v422_v61, %v421_v1  ;;  %v401_v26 = vsel %vm379_vm1, %v358_v16, 0.0  ;;  %v360_v28 = vld [vmem:[%s1024_s4 + $0x68] sm:$0xff]  ;;  %v373_v29 = vld [vmem:[%s1024_s4 + $0xd0] sm:$0xff]  ;;  %v403_v32 = vsel %vm379_vm1, %v359_v22, 0.0  ;;  %v374_v35 = vld [vmem:[%s1024_s4 + $0xd8] sm:$0xff] }
  0x3e   : > { %v434_v33 = vsel %vm379_vm1, %v372_v23, 0.0  ;;  %v361_v34 = vld [vmem:[%s1024_s4 + $0x70] sm:$0xff]  ;;  %v405_v38 = vsel %vm379_vm1, %v360_v28, 0.0  ;;  %v436_v39 = vsel %vm379_vm1, %v373_v29, 0.0  ;;  %v362_v40 = vld [vmem:[%s1024_s4 + $0x78] sm:$0xff]  ;;  %v375_v41 = vld [vmem:[%s1024_s4 + $0xe0] sm:$0xff] }
  0x3f   : > { %v390_v0 = vadd.f32 %v389_v53, %v388_v58  ;;  %v425_v13 = vadd.f32 %v424_v3, %v423_v7  ;;  %v407_v44 = vsel %vm379_vm1, %v361_v34, 0.0  ;;  %v438_v45 = vsel %vm379_vm1, %v374_v35, 0.0  ;;  %v376_v46 = vld [vmem:[%s1024_s4 + $0xe8] sm:$0xff]  ;;  %v377_v51 = vld [vmem:[%s1024_s4 + $0xf0] sm:$0xff]  ;;  %v378_v55 = vld [vmem:[%s1024_s4 + $0xf8] sm:$0xff] }
  0x40   : > { %v409_v49 = vsel %vm379_vm1, %v362_v40, 0.0  ;;  %v440_v50 = vsel %vm379_vm1, %v375_v41, 0.0  ;;  %v442_v54 = vsel %vm379_vm1, %v376_v46, 0.0  ;;  %v444_v58 = vsel %vm379_vm1, %v377_v51, 0.0  ;;  %v346_v10 = vld [vmem:[#allocation2] sm:$0x3] }
  0x41   : > { %v392_v6 = vadd.f32 %v391_v60, %v390_v0  ;;  %v427_v19 = vadd.f32 %v426_v9, %v425_v13  ;;  %v446_v61 = vsel %vm379_vm1, %v378_v55, 0.0  ;;  %vm499_vm4 = vcmask (!%p751_p10), 1043456  }
  0x43   : > { %v394_v12 = vadd.f32 %v393_v2, %v392_v6  ;;  %v429_v25 = vadd.f32 %v428_v15, %v427_v19  ;;  %v469_v15 = vld [vmem:[%s1147_s1 + $0x8] sm:$0xff] (!%p751_p10)  ;;  %v886_v19 = vmov (!%p751_p10), 0.0  }
  0x44   : > { %572 = vmatprep.mubr.f32.mxu0 (!%p751_p10), %v886_v19  ;;  %643 = vmatprep.mubr.f32.mxu1 (!%p751_p10), %v886_v19 }
  0x45   : > { %v396_v18 = vadd.f32 %v395_v8, %v394_v12  ;;  %v431_v31 = vadd.f32 %v430_v21, %v429_v25  ;;  %v472_v21 = vlaneseq (!%p751_p10)  ;;  %v470_v25 = vld [vmem:[%s1148_s2] sm:$0xf] (!%p751_p10) }
  0x47   : > { %v398_v24 = vadd.f32 %v397_v14, %v396_v18  ;;  %v433_v37 = vadd.f32 %v432_v27, %v431_v31  ;;  %v468_v14 = vld [vmem:[%s1147_s1] sm:$0xff] (!%p751_p10)  ;;  %v495_v18 = vcombine.high (!%p751_p10), %v469_v15, %v469_v15  ;;  %v473_v22 = vshrl.u32 (!%p751_p10), %v472_v21, 7 }
  0x48   : > { %v494_v17 = vcombine.high (!%p751_p10), %v468_v14, %v468_v14  ;;  %v887_v27 = vmov (!%p751_p10), 1983009808  }
  0x49   : > { %v400_v30 = vadd.f32 %v399_v20, %v398_v24  ;;  %v435_v43 = vadd.f32 %v434_v33, %v433_v37  ;;  %755 = vmatprep.subr.msk.mxu1 (!%p751_p10), %vm499_vm4, %v495_v18  ;;  %v474_v23 = vsub.s32 (!%p751_p10), 0, %v473_v22  ;;  %v482_v24 = vsub.s32 (!%p751_p10), 2, %v473_v22 }
  0x4a   : > { %752 = vmatprep.subr.msk.mxu0 (!%p751_p10), %vm499_vm4, %v494_v17  ;;  %756 = vmatpush1.msk.msra.mxu1 (!%p751_p10), %vm499_vm4, %v469_v15  ;;  %v657_v28 = vunpack.c.l.s4 (!%p751_p10), %v887_v27  ;;  %v486_v29 = vsub.s32 (!%p751_p10), 3, %v473_v22 }
  0x4b   : > { %v402_v36 = vadd.f32 %v401_v26, %v400_v30  ;;  %v437_v48 = vadd.f32 %v436_v39, %v435_v43  ;;  %753 = vmatpush1.msk.msra.mxu0 (!%p751_p10), %vm499_vm4, %v468_v14  ;;  %v478_v26 = vsub.s32 (!%p751_p10), 1, %v473_v22  ;;  %v475_v30 = vrot.slane (!%p751_p10), %v470_v25, %v474_v23 }
  0x4c   : > { %v483_v31 = vrot.slane (!%p751_p10), %v470_v25, %v482_v24  ;;  %v658_v33 = vunpack.c.0.s8 (!%p751_p10), %v657_v28  ;;  %v487_v34 = vrot.slane (!%p751_p10), %v470_v25, %v486_v29 }
  0x4d   : > { %v404_v42 = vadd.f32 %v403_v32, %v402_v36  ;;  %v439_v53 = vadd.f32 %v438_v45, %v437_v48  ;;  %v479_v32 = vrot.slane (!%p751_p10), %v470_v25, %v478_v26 }
  0x4f   : > { %v406_v47 = vadd.f32 %v405_v38, %v404_v42  ;;  %v441_v57 = vadd.f32 %v440_v50, %v439_v53  ;;  %v661_v42 = vsub.s32 (!%p751_p10), %v658_v33, %v473_v22 }
  0x51   : > { %v408_v52 = vadd.f32 %v407_v44, %v406_v47  ;;  %v443_v60 = vadd.f32 %v442_v54, %v441_v57 }
  0x53   : > { %v410_v56 = vadd.f32 %v409_v49, %v408_v52  ;;  %v445_v63 = vadd.f32 %v444_v58, %v443_v60 }
  0x55   : > { %v411_v59 = vrot.slane %v410_v56, 4  ;;  %v447_v1 = vadd.f32 %v446_v61, %v445_v63 }
  0x57   : > { %v412_v62 = vadd.f32 %v411_v59, %v410_v56  ;;  %v448_v3 = vrot.slane %v447_v1, 4 }
  0x59   : > { %v413_v0 = vrot.slane %v412_v62, 2  ;;  %v449_v4 = vadd.f32 %v448_v3, %v447_v1 }
  0x5b   : > { %v414_v2 = vadd.f32 %v413_v0, %v412_v62  ;;  %v450_v6 = vrot.slane %v449_v4, 2 }
  0x5d   : > { %v415_v5 = vrot.slane %v414_v2, 1  ;;  %v451_v7 = vadd.f32 %v450_v6, %v449_v4 }
  0x5f   : > { %v416_v8 = vadd.f32 %v415_v5, %v414_v2  ;;  %v452_v9 = vrot.slane %v451_v7, 1 }
  0x60   : > { %465 = sbr.rel (%p751_p10) target bundleno = 334 (0x14e), region = 78 }
  0x61   : > { %v453_v11 = vadd.f32 %v452_v9, %v451_v7 }
  0x63   : > { %v457_v12 = vsel %vm456_vm2, %v453_v11, %v416_v8 }
  0x64   : > { %v459_v13 = vadd.f32 %v457_v12, %v346_v10 }
  0x66   : > { %461 = vst.msk [vmem:[#allocation2] sm:$0x3] %vm460_vm3, %v459_v13 }
  0x6d   : > { %v466_v16 = vld [vmem:[#allocation2] sm:$0x3] }
  0x6e   : > { %v467_v20 = vmul.f32 0.00390625, %v466_v16 }
  0x70   : > { %754 = vmatmul.mubr.msk.f32.vlgmr.msra.gmra.mrb[0].mxu0 %vm379_vm1, %v467_v20  ;;  %757 = vmatmul.mubr.msk.f32.vlgmr.msra.gmra.mrb[0].mxu1 %vm379_vm1, %v467_v20 }
 0x143   : > { %v574_v35 = vpop.f32.mrb[0].mxu0  ;;  %v645_v36 = vpop.f32.mrb[0].mxu1 }
 0x144   : > { %v575_v37 = vadd.f32 %v574_v35, %v475_v30  ;;  %v646_v38 = vadd.f32 %v645_v36, %v483_v31  ;;  %v576_v39 = vpop.f32.mrb[1].mxu0  ;;  %v647_v40 = vpop.f32.mrb[1].mxu1 }
 0x145   : > { %v577_v41 = vadd.f32 %v576_v39, %v479_v32  ;;  %v648_v43 = vadd.f32 %v647_v40, %v487_v34 }
 0x147   : > { %v654_v44 = vcombine.low %v575_v37, %v577_v41  ;;  %v655_v45 = vcombine.low %v646_v38, %v648_v43 }
 0x149   : > { %v662_v46 = vrot.slane %v654_v44, %v661_v42  ;;  %v669_v47 = vrot.slane %v655_v45, %v661_v42 }
 0x14b   : > { %v670_v48 = vcombine.low %v662_v46, %v669_v47 }
 0x14d   : > { %672 = vst [vmem:[#allocation4] sm:$0xff] %v670_v48 }
 0x14e PF: > { %p1105_p11 = scmp.eq.s32.totalorder %s742_s17, 1  ;;  %s888_s12 = smov [#allocation4]  }
 0x14f   : > { %s683_s14 = sshll.u32 %s888_s12, 4  ;;  %s684_s14 = int_to_ptr.vmem [resolvable:$true] %s683_s14 }
 0x150   : > { %s815_s19 = scalar_lea.vmem %s684_s14, 128  ;;  %p822_p1 = scmp.lt.s32.totalorder %s684_s14, %s684_s14 }
 0x151   : > { %p816_p12 = scmp.ne.s32.totalorder %s684_s14, %s815_s19  ;;  %p823_p2 = scmp.lt.s32.totalorder %s815_s19, %s815_s19 }
 0x153   : > { %p817_p13 = pnand %p816_p12, %p1105_p11  ;;  %p824_p3 = por %p823_p2, %p822_p1 }
 0x155   : > { %p818_p0 = pneg %p817_p13 }
 0x157   : > { %p825_p4 = pnand %p824_p3, %p818_p0 }
 0x159   : > { %828 = shalt.err (!%p825_p4)
}
 0x15a   : > { %s829_s17 = scalar_lea.hbm %s1149_s3, 128 }
 0x15b   : > { %p830_p5 = scmp.ne.s32.totalorder %s1149_s3, %s829_s17  ;;  %p835_p8 = scmp.lt.u32.totalorder %s829_s17, %s1149_s3 }
 0x15d   : > { %p831_p6 = pnand %p830_p5, %p1105_p11 }
 0x15f   : > { %p832_p7 = pneg %p831_p6 }
 0x161   : > { %p837_p9 = pnand %p835_p8, %p832_p7 }
 0x163   : > { %840 = shalt.err (!%p837_p9)
}
 0x164   : > { %764 = dma.vmem_to_hbm [thread:$0]  (%p1105_p11), %s684_s14, 128, %s1149_s3, [#allocation5]  }
 0x165   : > { %862 = dma.done.wait (%p1105_p11), [#allocation5], 128  }
 0x166   : > { %864 = vsyncadd (%p1105_p11), [#allocation5], 4294967168 }
 0x167 PF: > { %s14_s16 = sadd.s32 1, %s883_s16   ;;  %s1151_s12 = smov %s871_s13 }
 0x168   : > { %p11_p10 = scmp.ge.s32.totalorder %s14_s16, 4   ;;  %s1152_s13 = smov %s945_s21 }
 0x169   : > { %s1153_s14 = smov %s879_s15  ;;  %s1154_s15 = smov %s1156_s18 }
 0x16a   :  { %13 = sbr.rel (!%p11_p10) target bundleno = 3 (0x3), region = 111 }
 0x171   :  { %696 = vsyncpa [#allocation5], 1 }
 0x172   :  { %698 = vsyncpa [#allocation5 + $0x1], 1 }

</bundles_post_ra>
